<compile_context>
chip_gen: v7x
topology: tpu7x:2x2x1
jax: 0.10.0
libtpu: 0.0.40
codegen_flags: <defaults>
</compile_context>

<pallas_src>
import functools

import jax
import jax.numpy as jnp
from jax.experimental import pallas as pl
from jax.experimental.pallas import tpu as pltpu


EPS = 1e-5          # nn.LayerNorm default
LANE = 128
SUBLANE = 8


def _round_up(n, m):
    return ((n + m - 1) // m) * m


def _pad2(a, rows, cols):
    """Zero-pad a 2-D array up to (rows, cols)."""
    return jnp.pad(a, ((0, rows - a.shape[0]), (0, cols - a.shape[1])))


def _layernorm(h, gamma, beta, true_dim):
    """Single-pass LayerNorm over the last axis, dividing by the TRUE feature dim.

    Padded lanes of h are zero and gamma/beta are zero-padded, so padded lanes stay exactly 0.
    Variance is clamped at 0 (E[h^2] - mu^2 can go slightly negative in fp32 for post-ReLU
    activations with large mean / tiny variance, which would NaN through rsqrt).
    """
    s = jnp.sum(h, axis=-1, keepdims=True)
    sq = jnp.sum(h * h, axis=-1, keepdims=True)
    mu = s / true_dim
    var = jnp.maximum(sq / true_dim - mu * mu, 0.0)
    return (h - mu) * jax.lax.rsqrt(var + EPS) * gamma + beta


def mlp_kernel(x_ref,
               w1_ref, b1_ref, g1_ref, be1_ref,
               w2_ref, b2_ref, g2_ref, be2_ref,
               w3_ref, b3_ref,
               o_ref, *, true_hid, true_hid2):
    # x streams in fp32; cast to the MXU dtype in-kernel (cheap VPU op hidden under the MXU).
    x = x_ref[...].astype(w1_ref.dtype)

    # Linear(in, hidden) -> ReLU -> LayerNorm(hidden) -> Dropout (identity, eval mode)
    h = jnp.dot(x, w1_ref[...], preferred_element_type=jnp.float32) + b1_ref[...]
    h = jnp.maximum(h, 0.0)
    h = _layernorm(h, g1_ref[...], be1_ref[...], true_hid)

    # Linear(hidden, hidden//2) -> ReLU -> LayerNorm(hidden//2) -> Dropout (identity)
    h2 = jnp.dot(h.astype(w2_ref.dtype), w2_ref[...],
                 preferred_element_type=jnp.float32) + b2_ref[...]
    h2 = jnp.maximum(h2, 0.0)
    h2 = _layernorm(h2, g2_ref[...], be2_ref[...], true_hid2)

    # Linear(hidden//2, out)
    o = jnp.dot(h2.astype(w3_ref.dtype), w3_ref[...],
                preferred_element_type=jnp.float32) + b3_ref[...]
    o_ref[...] = o.astype(o_ref.dtype)


def _vmem_bytes_estimate(tb, in_p, h_p, h2_p, out_p, mm_itemsize, out_itemsize,
                         single_buffer_consts):
    """Rough per-step VMEM footprint (drives the tile guardrail and vmem_limit_bytes)."""
    wbuf = 1 if single_buffer_consts else 2
    weights = (in_p * h_p + h_p * h2_p + h2_p * out_p) * mm_itemsize * wbuf
    vectors = 8 * (3 * h_p + 3 * h2_p + out_p) * 4 * wbuf   # (1,d) rows pad to 8 sublanes
    x_buf = 2 * tb * in_p * 4                                # double-buffered fp32 x tile
    o_buf = 2 * tb * out_p * out_itemsize                    # double-buffered out tile
    interm = tb * (in_p + 2 * h_p + 2 * h2_p + out_p) * 4    # fp32 live intermediates
    return weights + vectors + x_buf + o_buf + interm


def _vmem_capacity_bytes():
    try:
        return int(pltpu.get_tpu_info().vmem_capacity_bytes)
    except Exception:
        return 64 << 20   # conservative: v7x per-TensorCore VMEM


def _choose_batch_tile(B, block_b, fits):
    """Pick the batch tile (multiple of 8 sublanes) and the tile count.

    `fits(tb)` returns True when a tile of `tb` rows fits the VMEM budget.
    Keeps the tile count >= 2 and even when the batch is large enough, so v7x's two
    TensorCores both get balanced work under the "parallel" batch axis.
    """
    tb = min(_round_up(block_b, SUBLANE), _round_up(B, SUBLANE))
    while tb > 2 * SUBLANE and not fits(tb):          # VMEM guardrail (decisive on v7x)
        tb = _round_up(tb // 2, SUBLANE)
    n = pl.cdiv(B, tb)
    if n == 1 and B >= 2 * LANE:                      # big single tile -> split across 2 TCs
        n = 2
        tb = _round_up(pl.cdiv(B, n), SUBLANE)
    elif n > 1 and n % 2 == 1:                        # odd tile count -> rebalance to even
        tb = _round_up(pl.cdiv(B, n + 1), SUBLANE)
        n = pl.cdiv(B, tb)
    return tb, n


def mlp_baseline_forward(x, params, *, use_bf16_matmul=True, block_b=512,
                         out_dtype=jnp.float32):
    """Fused MLPBaseline forward pass.

    x: [B, input_dim] float32. Params in (in, out) layout / (1, dim) rows
    (PyTorch stores Linear weight as [out, in]; pre-transpose before calling).
    """
    (w1, b1, g1, be1, w2, b2, g2, be2, w3, b3) = params
    B, in_dim = x.shape
    hid = w1.shape[1]
    hid2 = w2.shape[1]
    out_dim = w3.shape[1]

    # Lane-dense padded feature dims (multiples of 128) -> unmasked full-lane vst,
    # full-width MXU passes.
    in_p = _round_up(in_dim, LANE)
    h_p = _round_up(hid, LANE)
    h2_p = _round_up(hid2, LANE)
    out_p = _round_up(out_dim, LANE)

    mm_dtype = jnp.bfloat16 if use_bf16_matmul else jnp.float32
    mm_itemsize = jnp.dtype(mm_dtype).itemsize
    out_itemsize = jnp.dtype(out_dtype).itemsize

    vmem_budget = int(_vmem_capacity_bytes() * 0.9)

    def fits(tb):
        return _vmem_bytes_estimate(tb, in_p, h_p, h2_p, out_p, mm_itemsize,
                                    out_itemsize, True) <= vmem_budget

    tb, n_tiles = _choose_batch_tile(B, block_b, fits)
    b_p = tb * n_tiles

    # x streams in fp32 and is cast in-kernel; pad only when ragged (pad is exact: padded
    # rows/lanes are zero and are sliced away / zeroed by the padded weights).
    x = x.astype(jnp.float32)
    x_in = x if (b_p == B and in_p == in_dim) else _pad2(x, b_p, in_p)

    # Weights in the MXU dtype (VMEM-resident, read once from HBM per call);
    # biases / LayerNorm affine params stay fp32.
    w1_p = _pad2(w1, in_p, h_p).astype(mm_dtype)
    w2_p = _pad2(w2, h_p, h2_p).astype(mm_dtype)
    w3_p = _pad2(w3, h2_p, out_p).astype(mm_dtype)
    b1_p = _pad2(b1, 1, h_p)
    b2_p = _pad2(b2, 1, h2_p)
    b3_p = _pad2(b3, 1, out_p)
    g1_p = _pad2(g1, 1, h_p)     # zero-padded gamma/beta keep padded lanes at exactly 0
    be1_p = _pad2(be1, 1, h_p)
    g2_p = _pad2(g2, 1, h2_p)
    be2_p = _pad2(be2, 1, h2_p)

    kernel = functools.partial(mlp_kernel, true_hid=hid, true_hid2=hid2)
    operands = (x_in, w1_p, b1_p, g1_p, be1_p, w2_p, b2_p, g2_p, be2_p, w3_p, b3_p)

    flops = 2 * b_p * (in_p * h_p + h_p * h2_p + h2_p * out_p)
    weight_bytes = sum(a.size * a.dtype.itemsize for a in operands[1:])
    bytes_accessed = x_in.size * 4 + weight_bytes + b_p * out_p * out_itemsize
    cost = pl.CostEstimate(flops=flops, transcendentals=2 * b_p,
                           bytes_accessed=bytes_accessed)

    def run(single_buffer_consts):
        est = _vmem_bytes_estimate(tb, in_p, h_p, h2_p, out_p, mm_itemsize,
                                   out_itemsize, single_buffer_consts)
        vmem_limit = min(vmem_budget, max(32 << 20, int(est * 1.3)))

        def const_spec(shape):
            if single_buffer_consts:
                # Grid-invariant block: single buffer (double-buffering a constant block
                # doubles its VMEM footprint for zero benefit).
                return pl.BlockSpec(shape, lambda i: (0, 0),
                                    pipeline_mode=pl.Buffered(1))
            return pl.BlockSpec(shape, lambda i: (0, 0))

        return pl.pallas_call(
            kernel,
            out_shape=jax.ShapeDtypeStruct((b_p, out_p), out_dtype),
            grid=(n_tiles,),
            in_specs=[
                pl.BlockSpec((tb, in_p), lambda i: (i, 0)),   # x: tiled along batch
                const_spec((in_p, h_p)),                      # weights/params: VMEM-resident
                const_spec((1, h_p)),
                const_spec((1, h_p)),
                const_spec((1, h_p)),
                const_spec((h_p, h2_p)),
                const_spec((1, h2_p)),
                const_spec((1, h2_p)),
                const_spec((1, h2_p)),
                const_spec((h2_p, out_p)),
                const_spec((1, out_p)),
            ],
            out_specs=pl.BlockSpec((tb, out_p), lambda i: (i, 0)),
            compiler_params=pltpu.CompilerParams(
                dimension_semantics=("parallel",),
                vmem_limit_bytes=vmem_limit),
            cost_estimate=cost,
        )(*operands)

    try:
        out_padded = run(single_buffer_consts=True)
    except Exception:
        # pl.Buffered(1) not accepted by this jax/Mosaic build -> default double-buffering.
        out_padded = run(single_buffer_consts=False)

    return out_padded[:B, :out_dim]


def init_params(key, input_dim, output_dim, hidden_dim):
    """Deterministic parameter init mirroring the nn.Module's layer shapes."""
    h2 = hidden_dim // 2
    ks = jax.random.split(key, 6)

    def linear(kw, kb, fan_in, fan_out):
        bound = 1.0 / (fan_in ** 0.5)
        w = jax.random.uniform(kw, (fan_in, fan_out), jnp.float32, -bound, bound)
        b = jax.random.uniform(kb, (1, fan_out), jnp.float32, -bound, bound)
        return w, b

    w1, b1 = linear(ks[0], ks[1], input_dim, hidden_dim)
    w2, b2 = linear(ks[2], ks[3], hidden_dim, h2)
    w3, b3 = linear(ks[4], ks[5], h2, output_dim)
    # LayerNorm affine params: PyTorch default init (ones / zeros)
    g1, be1 = jnp.ones((1, hidden_dim), jnp.float32), jnp.zeros((1, hidden_dim), jnp.float32)
    g2, be2 = jnp.ones((1, h2), jnp.float32), jnp.zeros((1, h2), jnp.float32)
    return (w1, b1, g1, be1, w2, b2, g2, be2, w3, b3)


def mlp_reference(x, params):
    (w1, b1, g1, be1, w2, b2, g2, be2, w3, b3) = params

    def ln(h, gamma, beta):
        mu = jnp.mean(h, axis=-1, keepdims=True)
        var = jnp.mean((h - mu) ** 2, axis=-1, keepdims=True)
        return (h - mu) * jax.lax.rsqrt(var + EPS) * gamma + beta

    h = jnp.maximum(x @ w1 + b1, 0.0)
    h = ln(h, g1, be1)
    h = jnp.maximum(h @ w2 + b2, 0.0)
    h = ln(h, g2, be2)
    return h @ w3 + b3


if __name__ == "__main__":
    key = jax.random.PRNGKey(0)
    k_x, k_p, k_x2 = jax.random.split(key, 3)

    batch, input_dim, hidden_dim, output_dim = 8, 16, 32, 4
    x = jax.random.normal(k_x, (batch, input_dim), jnp.float32)
    params = init_params(k_p, input_dim, output_dim, hidden_dim)
    ref = mlp_reference(x, params)

    # 1) fp32 MXU path: exact semantics of the module -> tight tolerance.
    out_f32 = jax.block_until_ready(mlp_baseline_forward(x, params, use_bf16_matmul=False))
    assert out_f32.shape == (batch, output_dim)
    assert jnp.allclose(out_f32, ref, atol=1e-4, rtol=1e-4), "fp32 kernel mismatch vs reference"

    # 2) bf16-MXU / fp32-accumulate production path -> loose tolerance (bf16 quantization).
    out_bf16 = jax.block_until_ready(mlp_baseline_forward(x, params, use_bf16_matmul=True))
    assert out_bf16.shape == (batch, output_dim)
    assert jnp.allclose(out_bf16, ref, atol=3e-2, rtol=3e-2), "bf16 kernel drifted vs reference"

    # 3) multi-tile grid (batch padded to an even number of tiles, pipelined).
    big_b = 300
    x_big = jax.random.normal(k_x2, (big_b, input_dim), jnp.float32)
    ref_big = mlp_reference(x_big, params)
    out_big = jax.block_until_ready(
        mlp_baseline_forward(x_big, params, use_bf16_matmul=False, block_b=128))
    assert out_big.shape == (big_b, output_dim)
    assert jnp.allclose(out_big, ref_big, atol=1e-4, rtol=1e-4), "tiled kernel mismatch"

    print("KERNEL_OK")
</pallas_src>

<mosaic_0001>
module attributes {stable_mosaic.version = 11 : i64} {
  func.func @mlp_kernel(%arg0: i32, %arg1: memref<8x128xf32, #tpu.memory_space<vmem>>, %arg2: memref<128x128xf32, #tpu.memory_space<vmem>>, %arg3: memref<1x128xf32, #tpu.memory_space<vmem>>, %arg4: memref<1x128xf32, #tpu.memory_space<vmem>>, %arg5: memref<1x128xf32, #tpu.memory_space<vmem>>, %arg6: memref<128x128xf32, #tpu.memory_space<vmem>>, %arg7: memref<1x128xf32, #tpu.memory_space<vmem>>, %arg8: memref<1x128xf32, #tpu.memory_space<vmem>>, %arg9: memref<1x128xf32, #tpu.memory_space<vmem>>, %arg10: memref<128x128xf32, #tpu.memory_space<vmem>>, %arg11: memref<1x128xf32, #tpu.memory_space<vmem>>, %arg12: memref<8x128xf32, #tpu.memory_space<vmem>>) attributes {dimension_semantics = [#tpu.dimension_semantics<parallel>], iteration_bounds = array<i64: 1>, scalar_prefetch = 0 : i64, scratch_operands = 0 : i64, tpu.core_type = #tpu.core_type<tc>, window_params = [{transform_indices = @transform_0, window_bounds = array<i64: 8, 128>}, {pipeline_mode = #tpu.pipeline_mode<synchronous>, transform_indices = @transform_1, window_bounds = array<i64: 128, 128>}, {pipeline_mode = #tpu.pipeline_mode<synchronous>, transform_indices = @transform_2, window_bounds = array<i64: 1, 128>}, {pipeline_mode = #tpu.pipeline_mode<synchronous>, transform_indices = @transform_3, window_bounds = array<i64: 1, 128>}, {pipeline_mode = #tpu.pipeline_mode<synchronous>, transform_indices = @transform_4, window_bounds = array<i64: 1, 128>}, {pipeline_mode = #tpu.pipeline_mode<synchronous>, transform_indices = @transform_5, window_bounds = array<i64: 128, 128>}, {pipeline_mode = #tpu.pipeline_mode<synchronous>, transform_indices = @transform_6, window_bounds = array<i64: 1, 128>}, {pipeline_mode = #tpu.pipeline_mode<synchronous>, transform_indices = @transform_7, window_bounds = array<i64: 1, 128>}, {pipeline_mode = #tpu.pipeline_mode<synchronous>, transform_indices = @transform_8, window_bounds = array<i64: 1, 128>}, {pipeline_mode = #tpu.pipeline_mode<synchronous>, transform_indices = @transform_9, window_bounds = array<i64: 128, 128>}, {pipeline_mode = #tpu.pipeline_mode<synchronous>, transform_indices = @transform_10, window_bounds = array<i64: 1, 128>}, {transform_indices = @transform_11, window_bounds = array<i64: 8, 128>}]} {
    %c0 = arith.constant 0 : index
    %c0_0 = arith.constant 0 : index
    %0 = vector.load %arg1[%c0, %c0_0] : memref<8x128xf32, #tpu.memory_space<vmem>>, vector<8x128xf32>
    %c0_1 = arith.constant 0 : index
    %c0_2 = arith.constant 0 : index
    %1 = vector.load %arg2[%c0_1, %c0_2] : memref<128x128xf32, #tpu.memory_space<vmem>>, vector<128x128xf32>
    %cst = arith.constant dense<0.000000e+00> : vector<8x128xf32>
    %2 = tpu.matmul %0, %1, %cst {dimension_numbers = #tpu.dot_dimension_numbers<[1], [0], [0], [1], [0, 0, 1, 1], [], []>} : vector<8x128xf32>, vector<128x128xf32>, vector<8x128xf32> -> vector<8x128xf32>
    %c0_3 = arith.constant 0 : index
    %c0_4 = arith.constant 0 : index
    %3 = vector.load %arg3[%c0_3, %c0_4] : memref<1x128xf32, #tpu.memory_space<vmem>>, vector<1x128xf32>
    %4 = vector.broadcast %3 : vector<1x128xf32> to vector<8x128xf32>
    %5 = arith.addf %2, %4 : vector<8x128xf32>
    %cst_5 = arith.constant 0.000000e+00 : f32
    %6 = vector.broadcast %cst_5 : f32 to vector<8x128xf32>
    %7 = arith.maximumf %5, %6 : vector<8x128xf32>
    %c0_6 = arith.constant 0 : index
    %c0_7 = arith.constant 0 : index
    %8 = vector.load %arg4[%c0_6, %c0_7] : memref<1x128xf32, #tpu.memory_space<vmem>>, vector<1x128xf32>
    %c0_8 = arith.constant 0 : index
    %c0_9 = arith.constant 0 : index
    %9 = vector.load %arg5[%c0_8, %c0_9] : memref<1x128xf32, #tpu.memory_space<vmem>>, vector<1x128xf32>
    %cst_10 = arith.constant dense<0.000000e+00> : vector<8xf32>
    %10 = vector.multi_reduction <add>, %7, %cst_10 [1] : vector<8x128xf32> to vector<8xf32>
    %11 = vector.shape_cast %10 : vector<8xf32> to vector<8x1xf32>
    %12 = arith.mulf %7, %7 : vector<8x128xf32>
    %cst_11 = arith.constant dense<0.000000e+00> : vector<8xf32>
    %13 = vector.multi_reduction <add>, %12, %cst_11 [1] : vector<8x128xf32> to vector<8xf32>
    %14 = vector.shape_cast %13 : vector<8xf32> to vector<8x1xf32>
    %cst_12 = arith.constant 3.200000e+01 : f32
    %15 = vector.broadcast %cst_12 : f32 to vector<8x1xf32>
    %16 = arith.divf %11, %15 : vector<8x1xf32>
    %cst_13 = arith.constant 3.200000e+01 : f32
    %17 = vector.broadcast %cst_13 : f32 to vector<8x1xf32>
    %18 = arith.divf %14, %17 : vector<8x1xf32>
    %19 = arith.mulf %16, %16 : vector<8x1xf32>
    %20 = arith.subf %18, %19 : vector<8x1xf32>
    %cst_14 = arith.constant 0.000000e+00 : f32
    %21 = vector.broadcast %cst_14 : f32 to vector<8x1xf32>
    %22 = arith.maximumf %20, %21 : vector<8x1xf32>
    %23 = vector.broadcast %16 : vector<8x1xf32> to vector<8x128xf32>
    %24 = arith.subf %7, %23 : vector<8x128xf32>
    %cst_15 = arith.constant 9.99999974E-6 : f32
    %25 = vector.broadcast %cst_15 : f32 to vector<8x1xf32>
    %26 = arith.addf %22, %25 : vector<8x1xf32>
    %27 = math.rsqrt %26 : vector<8x1xf32>
    %28 = vector.broadcast %27 : vector<8x1xf32> to vector<8x128xf32>
    %29 = arith.mulf %24, %28 : vector<8x128xf32>
    %30 = vector.broadcast %8 : vector<1x128xf32> to vector<8x128xf32>
    %31 = arith.mulf %29, %30 : vector<8x128xf32>
    %32 = vector.broadcast %9 : vector<1x128xf32> to vector<8x128xf32>
    %33 = arith.addf %31, %32 : vector<8x128xf32>
    %c0_16 = arith.constant 0 : index
    %c0_17 = arith.constant 0 : index
    %34 = vector.load %arg6[%c0_16, %c0_17] : memref<128x128xf32, #tpu.memory_space<vmem>>, vector<128x128xf32>
    %cst_18 = arith.constant dense<0.000000e+00> : vector<8x128xf32>
    %35 = tpu.matmul %33, %34, %cst_18 {dimension_numbers = #tpu.dot_dimension_numbers<[1], [0], [0], [1], [0, 0, 1, 1], [], []>} : vector<8x128xf32>, vector<128x128xf32>, vector<8x128xf32> -> vector<8x128xf32>
    %c0_19 = arith.constant 0 : index
    %c0_20 = arith.constant 0 : index
    %36 = vector.load %arg7[%c0_19, %c0_20] : memref<1x128xf32, #tpu.memory_space<vmem>>, vector<1x128xf32>
    %37 = vector.broadcast %36 : vector<1x128xf32> to vector<8x128xf32>
    %38 = arith.addf %35, %37 : vector<8x128xf32>
    %cst_21 = arith.constant 0.000000e+00 : f32
    %39 = vector.broadcast %cst_21 : f32 to vector<8x128xf32>
    %40 = arith.maximumf %38, %39 : vector<8x128xf32>
    %c0_22 = arith.constant 0 : index
    %c0_23 = arith.constant 0 : index
    %41 = vector.load %arg8[%c0_22, %c0_23] : memref<1x128xf32, #tpu.memory_space<vmem>>, vector<1x128xf32>
    %c0_24 = arith.constant 0 : index
    %c0_25 = arith.constant 0 : index
    %42 = vector.load %arg9[%c0_24, %c0_25] : memref<1x128xf32, #tpu.memory_space<vmem>>, vector<1x128xf32>
    %cst_26 = arith.constant dense<0.000000e+00> : vector<8xf32>
    %43 = vector.multi_reduction <add>, %40, %cst_26 [1] : vector<8x128xf32> to vector<8xf32>
    %44 = vector.shape_cast %43 : vector<8xf32> to vector<8x1xf32>
    %45 = arith.mulf %40, %40 : vector<8x128xf32>
    %cst_27 = arith.constant dense<0.000000e+00> : vector<8xf32>
    %46 = vector.multi_reduction <add>, %45, %cst_27 [1] : vector<8x128xf32> to vector<8xf32>
    %47 = vector.shape_cast %46 : vector<8xf32> to vector<8x1xf32>
    %cst_28 = arith.constant 1.600000e+01 : f32
    %48 = vector.broadcast %cst_28 : f32 to vector<8x1xf32>
    %49 = arith.divf %44, %48 : vector<8x1xf32>
    %cst_29 = arith.constant 1.600000e+01 : f32
    %50 = vector.broadcast %cst_29 : f32 to vector<8x1xf32>
    %51 = arith.divf %47, %50 : vector<8x1xf32>
    %52 = arith.mulf %49, %49 : vector<8x1xf32>
    %53 = arith.subf %51, %52 : vector<8x1xf32>
    %cst_30 = arith.constant 0.000000e+00 : f32
    %54 = vector.broadcast %cst_30 : f32 to vector<8x1xf32>
    %55 = arith.maximumf %53, %54 : vector<8x1xf32>
    %56 = vector.broadcast %49 : vector<8x1xf32> to vector<8x128xf32>
    %57 = arith.subf %40, %56 : vector<8x128xf32>
    %cst_31 = arith.constant 9.99999974E-6 : f32
    %58 = vector.broadcast %cst_31 : f32 to vector<8x1xf32>
    %59 = arith.addf %55, %58 : vector<8x1xf32>
    %60 = math.rsqrt %59 : vector<8x1xf32>
    %61 = vector.broadcast %60 : vector<8x1xf32> to vector<8x128xf32>
    %62 = arith.mulf %57, %61 : vector<8x128xf32>
    %63 = vector.broadcast %41 : vector<1x128xf32> to vector<8x128xf32>
    %64 = arith.mulf %62, %63 : vector<8x128xf32>
    %65 = vector.broadcast %42 : vector<1x128xf32> to vector<8x128xf32>
    %66 = arith.addf %64, %65 : vector<8x128xf32>
    %c0_32 = arith.constant 0 : index
    %c0_33 = arith.constant 0 : index
    %67 = vector.load %arg10[%c0_32, %c0_33] : memref<128x128xf32, #tpu.memory_space<vmem>>, vector<128x128xf32>
    %cst_34 = arith.constant dense<0.000000e+00> : vector<8x128xf32>
    %68 = tpu.matmul %66, %67, %cst_34 {dimension_numbers = #tpu.dot_dimension_numbers<[1], [0], [0], [1], [0, 0, 1, 1], [], []>} : vector<8x128xf32>, vector<128x128xf32>, vector<8x128xf32> -> vector<8x128xf32>
    %c0_35 = arith.constant 0 : index
    %c0_36 = arith.constant 0 : index
    %69 = vector.load %arg11[%c0_35, %c0_36] : memref<1x128xf32, #tpu.memory_space<vmem>>, vector<1x128xf32>
    %70 = vector.broadcast %69 : vector<1x128xf32> to vector<8x128xf32>
    %71 = arith.addf %68, %70 : vector<8x128xf32>
    %c0_37 = arith.constant 0 : index
    %c0_38 = arith.constant 0 : index
    %72 = vector.load %arg12[%c0_37, %c0_38] : memref<8x128xf32, #tpu.memory_space<vmem>>, vector<8x128xf32>
    tpu.vector_store %arg12[%c0_37, %c0_38], %71 {strides = array<i32>} : memref<8x128xf32, #tpu.memory_space<vmem>>, vector<8x128xf32>,
    return
  }
  func.func @transform_0(%arg0: i32) -> (i32, i32) {
    %c0_i32 = arith.constant 0 : i32
    %c0_i32_0 = arith.constant 0 : i32
    return %arg0, %c0_i32 : i32, i32
  }
  func.func @transform_1(%arg0: i32) -> (i32, i32) {
    %c0_i32 = arith.constant 0 : i32
    %c0_i32_0 = arith.constant 0 : i32
    %c0_i32_1 = arith.constant 0 : i32
    return %c0_i32, %c0_i32_0 : i32, i32
  }
  func.func @transform_2(%arg0: i32) -> (i32, i32) {
    %c0_i32 = arith.constant 0 : i32
    %c0_i32_0 = arith.constant 0 : i32
    %c0_i32_1 = arith.constant 0 : i32
    return %c0_i32, %c0_i32_0 : i32, i32
  }
  func.func @transform_3(%arg0: i32) -> (i32, i32) {
    %c0_i32 = arith.constant 0 : i32
    %c0_i32_0 = arith.constant 0 : i32
    %c0_i32_1 = arith.constant 0 : i32
    return %c0_i32, %c0_i32_0 : i32, i32
  }
  func.func @transform_4(%arg0: i32) -> (i32, i32) {
    %c0_i32 = arith.constant 0 : i32
    %c0_i32_0 = arith.constant 0 : i32
    %c0_i32_1 = arith.constant 0 : i32
    return %c0_i32, %c0_i32_0 : i32, i32
  }
  func.func @transform_5(%arg0: i32) -> (i32, i32) {
    %c0_i32 = arith.constant 0 : i32
    %c0_i32_0 = arith.constant 0 : i32
    %c0_i32_1 = arith.constant 0 : i32
    return %c0_i32, %c0_i32_0 : i32, i32
  }
  func.func @transform_6(%arg0: i32) -> (i32, i32) {
    %c0_i32 = arith.constant 0 : i32
    %c0_i32_0 = arith.constant 0 : i32
    %c0_i32_1 = arith.constant 0 : i32
    return %c0_i32, %c0_i32_0 : i32, i32
  }
  func.func @transform_7(%arg0: i32) -> (i32, i32) {
    %c0_i32 = arith.constant 0 : i32
    %c0_i32_0 = arith.constant 0 : i32
    %c0_i32_1 = arith.constant 0 : i32
    return %c0_i32, %c0_i32_0 : i32, i32
  }
  func.func @transform_8(%arg0: i32) -> (i32, i32) {
    %c0_i32 = arith.constant 0 : i32
    %c0_i32_0 = arith.constant 0 : i32
    %c0_i32_1 = arith.constant 0 : i32
    return %c0_i32, %c0_i32_0 : i32, i32
  }
  func.func @transform_9(%arg0: i32) -> (i32, i32) {
    %c0_i32 = arith.constant 0 : i32
    %c0_i32_0 = arith.constant 0 : i32
    %c0_i32_1 = arith.constant 0 : i32
    return %c0_i32, %c0_i32_0 : i32, i32
  }
  func.func @transform_10(%arg0: i32) -> (i32, i32) {
    %c0_i32 = arith.constant 0 : i32
    %c0_i32_0 = arith.constant 0 : i32
    %c0_i32_1 = arith.constant 0 : i32
    return %c0_i32, %c0_i32_0 : i32, i32
  }
  func.func @transform_11(%arg0: i32) -> (i32, i32) {
    %c0_i32 = arith.constant 0 : i32
    %c0_i32_0 = arith.constant 0 : i32
    return %arg0, %c0_i32 : i32, i32
  }
}

module attributes {stable_mosaic.version = 11 : i64} {
  func.func @mlp_kernel(%arg0: i32, %arg1: memref<8x128xf32, #tpu.memory_space<vmem>>, %arg2: memref<128x128xf32, #tpu.memory_space<vmem>>, %arg3: memref<1x128xf32, #tpu.memory_space<vmem>>, %arg4: memref<1x128xf32, #tpu.memory_space<vmem>>, %arg5: memref<1x128xf32, #tpu.memory_space<vmem>>, %arg6: memref<128x128xf32, #tpu.memory_space<vmem>>, %arg7: memref<1x128xf32, #tpu.memory_space<vmem>>, %arg8: memref<1x128xf32, #tpu.memory_space<vmem>>, %arg9: memref<1x128xf32, #tpu.memory_space<vmem>>, %arg10: memref<128x128xf32, #tpu.memory_space<vmem>>, %arg11: memref<1x128xf32, #tpu.memory_space<vmem>>, %arg12: memref<8x128xf32, #tpu.memory_space<vmem>>) attributes {dimension_semantics = [#tpu.dimension_semantics<parallel>], iteration_bounds = array<i64: 1>, scalar_prefetch = 0 : i64, scratch_operands = 0 : i64, tpu.core_type = #tpu.core_type<tc>, window_params = [{transform_indices = @transform_0, window_bounds = array<i64: 8, 128>}, {pipeline_mode = #tpu.pipeline_mode<synchronous>, transform_indices = @transform_1, window_bounds = array<i64: 128, 128>}, {pipeline_mode = #tpu.pipeline_mode<synchronous>, transform_indices = @transform_2, window_bounds = array<i64: 1, 128>}, {pipeline_mode = #tpu.pipeline_mode<synchronous>, transform_indices = @transform_3, window_bounds = array<i64: 1, 128>}, {pipeline_mode = #tpu.pipeline_mode<synchronous>, transform_indices = @transform_4, window_bounds = array<i64: 1, 128>}, {pipeline_mode = #tpu.pipeline_mode<synchronous>, transform_indices = @transform_5, window_bounds = array<i64: 128, 128>}, {pipeline_mode = #tpu.pipeline_mode<synchronous>, transform_indices = @transform_6, window_bounds = array<i64: 1, 128>}, {pipeline_mode = #tpu.pipeline_mode<synchronous>, transform_indices = @transform_7, window_bounds = array<i64: 1, 128>}, {pipeline_mode = #tpu.pipeline_mode<synchronous>, transform_indices = @transform_8, window_bounds = array<i64: 1, 128>}, {pipeline_mode = #tpu.pipeline_mode<synchronous>, transform_indices = @transform_9, window_bounds = array<i64: 128, 128>}, {pipeline_mode = #tpu.pipeline_mode<synchronous>, transform_indices = @transform_10, window_bounds = array<i64: 1, 128>}, {transform_indices = @transform_11, window_bounds = array<i64: 8, 128>}]} {
    %c0 = arith.constant 0 : index
    %c0_0 = arith.constant 0 : index
    %0 = vector.load %arg1[%c0, %c0_0] : memref<8x128xf32, #tpu.memory_space<vmem>>, vector<8x128xf32>
    %c0_1 = arith.constant 0 : index
    %c0_2 = arith.constant 0 : index
    %1 = vector.load %arg2[%c0_1, %c0_2] : memref<128x128xf32, #tpu.memory_space<vmem>>, vector<128x128xf32>
    %cst = arith.constant dense<0.000000e+00> : vector<8x128xf32>
    %2 = tpu.matmul %0, %1, %cst {dimension_numbers = #tpu.dot_dimension_numbers<[1], [0], [0], [1], [0, 0, 1, 1], [], []>} : vector<8x128xf32>, vector<128x128xf32>, vector<8x128xf32> -> vector<8x128xf32>
    %c0_3 = arith.constant 0 : index
    %c0_4 = arith.constant 0 : index
    %3 = vector.load %arg3[%c0_3, %c0_4] : memref<1x128xf32, #tpu.memory_space<vmem>>, vector<1x128xf32>
    %4 = vector.broadcast %3 : vector<1x128xf32> to vector<8x128xf32>
    %5 = arith.addf %2, %4 : vector<8x128xf32>
    %cst_5 = arith.constant 0.000000e+00 : f32
    %6 = vector.broadcast %cst_5 : f32 to vector<8x128xf32>
    %7 = arith.maximumf %5, %6 : vector<8x128xf32>
    %c0_6 = arith.constant 0 : index
    %c0_7 = arith.constant 0 : index
    %8 = vector.load %arg4[%c0_6, %c0_7] : memref<1x128xf32, #tpu.memory_space<vmem>>, vector<1x128xf32>
    %c0_8 = arith.constant 0 : index
    %c0_9 = arith.constant 0 : index
    %9 = vector.load %arg5[%c0_8, %c0_9] : memref<1x128xf32, #tpu.memory_space<vmem>>, vector<1x128xf32>
    %cst_10 = arith.constant dense<0.000000e+00> : vector<8xf32>
    %10 = vector.multi_reduction <add>, %7, %cst_10 [1] : vector<8x128xf32> to vector<8xf32>
    %11 = vector.shape_cast %10 : vector<8xf32> to vector<8x1xf32>
    %12 = arith.mulf %7, %7 : vector<8x128xf32>
    %cst_11 = arith.constant dense<0.000000e+00> : vector<8xf32>
    %13 = vector.multi_reduction <add>, %12, %cst_11 [1] : vector<8x128xf32> to vector<8xf32>
    %14 = vector.shape_cast %13 : vector<8xf32> to vector<8x1xf32>
    %cst_12 = arith.constant 3.200000e+01 : f32
    %15 = vector.broadcast %cst_12 : f32 to vector<8x1xf32>
    %16 = arith.divf %11, %15 : vector<8x1xf32>
    %cst_13 = arith.constant 3.200000e+01 : f32
    %17 = vector.broadcast %cst_13 : f32 to vector<8x1xf32>
    %18 = arith.divf %14, %17 : vector<8x1xf32>
    %19 = arith.mulf %16, %16 : vector<8x1xf32>
    %20 = arith.subf %18, %19 : vector<8x1xf32>
    %cst_14 = arith.constant 0.000000e+00 : f32
    %21 = vector.broadcast %cst_14 : f32 to vector<8x1xf32>
    %22 = arith.maximumf %20, %21 : vector<8x1xf32>
    %23 = vector.broadcast %16 : vector<8x1xf32> to vector<8x128xf32>
    %24 = arith.subf %7, %23 : vector<8x128xf32>
    %cst_15 = arith.constant 9.99999974E-6 : f32
    %25 = vector.broadcast %cst_15 : f32 to vector<8x1xf32>
    %26 = arith.addf %22, %25 : vector<8x1xf32>
    %27 = math.rsqrt %26 : vector<8x1xf32>
    %28 = vector.broadcast %27 : vector<8x1xf32> to vector<8x128xf32>
    %29 = arith.mulf %24, %28 : vector<8x128xf32>
    %30 = vector.broadcast %8 : vector<1x128xf32> to vector<8x128xf32>
    %31 = arith.mulf %29, %30 : vector<8x128xf32>
    %32 = vector.broadcast %9 : vector<1x128xf32> to vector<8x128xf32>
    %33 = arith.addf %31, %32 : vector<8x128xf32>
    %c0_16 = arith.constant 0 : index
    %c0_17 = arith.constant 0 : index
    %34 = vector.load %arg6[%c0_16, %c0_17] : memref<128x128xf32, #tpu.memory_space<vmem>>, vector<128x128xf32>
    %cst_18 = arith.constant dense<0.000000e+00> : vector<8x128xf32>
    %35 = tpu.matmul %33, %34, %cst_18 {dimension_numbers = #tpu.dot_dimension_numbers<[1], [0], [0], [1], [0, 0, 1, 1], [], []>} : vector<8x128xf32>, vector<128x128xf32>, vector<8x128xf32> -> vector<8x128xf32>
    %c0_19 = arith.constant 0 : index
    %c0_20 = arith.constant 0 : index
    %36 = vector.load %arg7[%c0_19, %c0_20] : memref<1x128xf32, #tpu.memory_space<vmem>>, vector<1x128xf32>
    %37 = vector.broadcast %36 : vector<1x128xf32> to vector<8x128xf32>
    %38 = arith.addf %35, %37 : vector<8x128xf32>
    %cst_21 = arith.constant 0.000000e+00 : f32
    %39 = vector.broadcast %cst_21 : f32 to vector<8x128xf32>
    %40 = arith.maximumf %38, %39 : vector<8x128xf32>
    %c0_22 = arith.constant 0 : index
    %c0_23 = arith.constant 0 : index
    %41 = vector.load %arg8[%c0_22, %c0_23] : memref<1x128xf32, #tpu.memory_space<vmem>>, vector<1x128xf32>
    %c0_24 = arith.constant 0 : index
    %c0_25 = arith.constant 0 : index
    %42 = vector.load %arg9[%c0_24, %c0_25] : memref<1x128xf32, #tpu.memory_space<vmem>>, vector<1x128xf32>
    %cst_26 = arith.constant dense<0.000000e+00> : vector<8xf32>
    %43 = vector.multi_reduction <add>, %40, %cst_26 [1] : vector<8x128xf32> to vector<8xf32>
    %44 = vector.shape_cast %43 : vector<8xf32> to vector<8x1xf32>
    %45 = arith.mulf %40, %40 : vector<8x128xf32>
    %cst_27 = arith.constant dense<0.000000e+00> : vector<8xf32>
    %46 = vector.multi_reduction <add>, %45, %cst_27 [1] : vector<8x128xf32> to vector<8xf32>
    %47 = vector.shape_cast %46 : vector<8xf32> to vector<8x1xf32>
    %cst_28 = arith.constant 1.600000e+01 : f32
    %48 = vector.broadcast %cst_28 : f32 to vector<8x1xf32>
    %49 = arith.divf %44, %48 : vector<8x1xf32>
    %cst_29 = arith.constant 1.600000e+01 : f32
    %50 = vector.broadcast %cst_29 : f32 to vector<8x1xf32>
    %51 = arith.divf %47, %50 : vector<8x1xf32>
    %52 = arith.mulf %49, %49 : vector<8x1xf32>
    %53 = arith.subf %51, %52 : vector<8x1xf32>
    %cst_30 = arith.constant 0.000000e+00 : f32
    %54 = vector.broadcast %cst_30 : f32 to vector<8x1xf32>
    %55 = arith.maximumf %53, %54 : vector<8x1xf32>
    %56 = vector.broadcast %49 : vector<8x1xf32> to vector<8x128xf32>
    %57 = arith.subf %40, %56 : vector<8x128xf32>
    %cst_31 = arith.constant 9.99999974E-6 : f32
    %58 = vector.broadcast %cst_31 : f32 to vector<8x1xf32>
    %59 = arith.addf %55, %58 : vector<8x1xf32>
    %60 = math.rsqrt %59 : vector<8x1xf32>
    %61 = vector.broadcast %60 : vector<8x1xf32> to vector<8x128xf32>
    %62 = arith.mulf %57, %61 : vector<8x128xf32>
    %63 = vector.broadcast %41 : vector<1x128xf32> to vector<8x128xf32>
    %64 = arith.mulf %62, %63 : vector<8x128xf32>
    %65 = vector.broadcast %42 : vector<1x128xf32> to vector<8x128xf32>
    %66 = arith.addf %64, %65 : vector<8x128xf32>
    %c0_32 = arith.constant 0 : index
    %c0_33 = arith.constant 0 : index
    %67 = vector.load %arg10[%c0_32, %c0_33] : memref<128x128xf32, #tpu.memory_space<vmem>>, vector<128x128xf32>
    %cst_34 = arith.constant dense<0.000000e+00> : vector<8x128xf32>
    %68 = tpu.matmul %66, %67, %cst_34 {dimension_numbers = #tpu.dot_dimension_numbers<[1], [0], [0], [1], [0, 0, 1, 1], [], []>} : vector<8x128xf32>, vector<128x128xf32>, vector<8x128xf32> -> vector<8x128xf32>
    %c0_35 = arith.constant 0 : index
    %c0_36 = arith.constant 0 : index
    %69 = vector.load %arg11[%c0_35, %c0_36] : memref<1x128xf32, #tpu.memory_space<vmem>>, vector<1x128xf32>
    %70 = vector.broadcast %69 : vector<1x128xf32> to vector<8x128xf32>
    %71 = arith.addf %68, %70 : vector<8x128xf32>
    %c0_37 = arith.constant 0 : index
    %c0_38 = arith.constant 0 : index
    %72 = vector.load %arg12[%c0_37, %c0_38] : memref<8x128xf32, #tpu.memory_space<vmem>>, vector<8x128xf32>
    tpu.vector_store %arg12[%c0_37, %c0_38], %71 {strides = array<i32>} : memref<8x128xf32, #tpu.memory_space<vmem>>, vector<8x128xf32>,
    return
  }
  func.func @transform_0(%arg0: i32) -> (i32, i32) {
    %c0_i32 = arith.constant 0 : i32
    %c0_i32_0 = arith.constant 0 : i32
    return %arg0, %c0_i32 : i32, i32
  }
  func.func @transform_1(%arg0: i32) -> (i32, i32) {
    %c0_i32 = arith.constant 0 : i32
    %c0_i32_0 = arith.constant 0 : i32
    %c0_i32_1 = arith.constant 0 : i32
    return %c0_i32, %c0_i32_0 : i32, i32
  }
  func.func @transform_2(%arg0: i32) -> (i32, i32) {
    %c0_i32 = arith.constant 0 : i32
    %c0_i32_0 = arith.constant 0 : i32
    %c0_i32_1 = arith.constant 0 : i32
    return %c0_i32, %c0_i32_0 : i32, i32
  }
  func.func @transform_3(%arg0: i32) -> (i32, i32) {
    %c0_i32 = arith.constant 0 : i32
    %c0_i32_0 = arith.constant 0 : i32
    %c0_i32_1 = arith.constant 0 : i32
    return %c0_i32, %c0_i32_0 : i32, i32
  }
  func.func @transform_4(%arg0: i32) -> (i32, i32) {
    %c0_i32 = arith.constant 0 : i32
    %c0_i32_0 = arith.constant 0 : i32
    %c0_i32_1 = arith.constant 0 : i32
    return %c0_i32, %c0_i32_0 : i32, i32
  }
  func.func @transform_5(%arg0: i32) -> (i32, i32) {
    %c0_i32 = arith.constant 0 : i32
    %c0_i32_0 = arith.constant 0 : i32
    %c0_i32_1 = arith.constant 0 : i32
    return %c0_i32, %c0_i32_0 : i32, i32
  }
  func.func @transform_6(%arg0: i32) -> (i32, i32) {
    %c0_i32 = arith.constant 0 : i32
    %c0_i32_0 = arith.constant 0 : i32
    %c0_i32_1 = arith.constant 0 : i32
    return %c0_i32, %c0_i32_0 : i32, i32
  }
  func.func @transform_7(%arg0: i32) -> (i32, i32) {
    %c0_i32 = arith.constant 0 : i32
    %c0_i32_0 = arith.constant 0 : i32
    %c0_i32_1 = arith.constant 0 : i32
    return %c0_i32, %c0_i32_0 : i32, i32
  }
  func.func @transform_8(%arg0: i32) -> (i32, i32) {
    %c0_i32 = arith.constant 0 : i32
    %c0_i32_0 = arith.constant 0 : i32
    %c0_i32_1 = arith.constant 0 : i32
    return %c0_i32, %c0_i32_0 : i32, i32
  }
  func.func @transform_9(%arg0: i32) -> (i32, i32) {
    %c0_i32 = arith.constant 0 : i32
    %c0_i32_0 = arith.constant 0 : i32
    %c0_i32_1 = arith.constant 0 : i32
    return %c0_i32, %c0_i32_0 : i32, i32
  }
  func.func @transform_10(%arg0: i32) -> (i32, i32) {
    %c0_i32 = arith.constant 0 : i32
    %c0_i32_0 = arith.constant 0 : i32
    %c0_i32_1 = arith.constant 0 : i32
    return %c0_i32, %c0_i32_0 : i32, i32
  }
  func.func @transform_11(%arg0: i32) -> (i32, i32) {
    %c0_i32 = arith.constant 0 : i32
    %c0_i32_0 = arith.constant 0 : i32
    return %arg0, %c0_i32 : i32, i32
  }
}

</mosaic_0001>

<bundles_post_ra>
// kernel: tpu_custom_call.1
= control target key start
LH: loop header
LB: loop body
LE: loop exit
PB: predicated region body
PF: predicated region fallthrough
CT: control target
= control target key end

     0   :  { %16 = vsyncpa [#allocation3], 0  ;;  %s1008_s0 = inlined_call_operand.hbm [shape: f32[8,128], index: 0, kind: input, shape index: {}]   ;;  %s1009_s1 = inlined_call_operand.hbm [shape: f32[128,128], index: 1, kind: input, shape index: {}]   ;;  %s1010_s2 = inlined_call_operand.vmem [shape: f32[1,128], index: 2, kind: input, shape index: {}]   ;;  %s1011_s3 = inlined_call_operand.vmem [shape: f32[1,128], index: 3, kind: input, shape index: {}]   ;;  %s1012_s4 = inlined_call_operand.vmem [shape: f32[1,128], index: 4, kind: input, shape index: {}]   ;;  %s1013_s5 = inlined_call_operand.hbm [shape: f32[128,128], index: 5, kind: input, shape index: {}]   ;;  %s1014_s6 = inlined_call_operand.vmem [shape: f32[1,128], index: 6, kind: input, shape index: {}]   ;;  %s1015_s7 = inlined_call_operand.vmem [shape: f32[1,128], index: 7, kind: input, shape index: {}]   ;;  %s1016_s8 = inlined_call_operand.vmem [shape: f32[1,128], index: 8, kind: input, shape index: {}]   ;;  %s1017_s9 = inlined_call_operand.hbm [shape: f32[128,128], index: 9, kind: input, shape index: {}]   ;;  %s1018_s10 = inlined_call_operand.vmem [shape: f32[1,128], index: 10, kind: input, shape index: {}]   ;;  %s1019_s11 = inlined_call_operand.hbm [shape: f32[8,128], index: 11, kind: output, shape index: {}]  }
   0x1   :  { %17 = vsyncpa [#allocation6], 0 }
   0x2   :  { %18 = vsyncpa [#allocation9], 0 }
   0x3   :  { %19 = vsyncpa [#allocation4], 0  ;;  %s821_s17 = smov [#allocation5]   ;;  %s703_s21 = scalar_lea.hbm %s1009_s1, 2048 }
   0x4   :  { %s35_s18 = sshll.u32 %s821_s17, 4  ;;  %p704_p0 = scmp.ne.s32.totalorder %s1009_s1, %s703_s21  ;;  %s36_s18 = int_to_ptr.vmem [resolvable:$true] %s35_s18 }
   0x5   :  { %p707_p1 = scmp.lt.u32.totalorder %s703_s21, %s1009_s1 }
   0x7   :  { %p709_p2 = pnand %p707_p1, %p704_p0 }
   0x9   :  { %712 = shalt.err (!%p709_p2)
}
   0xa   :  { %s713_s26 = scalar_lea.vmem %s36_s18, 2048  ;;  %p718_p4 = scmp.lt.s32.totalorder %s36_s18, %s36_s18 }
   0xb   :  { %p714_p3 = scmp.ne.s32.totalorder %s36_s18, %s713_s26  ;;  %p719_p5 = scmp.lt.s32.totalorder %s713_s26, %s713_s26 }
   0xd   :  { %p720_p6 = por %p719_p5, %p718_p4 }
   0xf   :  { %p721_p7 = pnand %p720_p6, %p714_p3 }
  0x11   :  { %724 = shalt.err (!%p721_p7)
}
  0x12   :  { %s822_s27 = smov 128   ;;  %s823_s28 = smov 8  }
  0x13   :  { %41 = dma.hbm_to_vmem [thread:$0]  %s1009_s1, 2048, %s36_s18, [#allocation6], %s822_s27, %s822_s27, %s823_s28  }
  0x14   :  { %s824_s12 = smov [#allocation2]   ;;  %s825_s14 = smov [#allocation7]  }
  0x15   :  { %s26_s13 = sshll.u32 %s824_s12, 4  ;;  %s53_s15 = sshll.u32 %s825_s14, 4  ;;  %s27_s13 = int_to_ptr.vmem [resolvable:$true] %s26_s13  ;;  %s54_s15 = int_to_ptr.vmem [resolvable:$true] %s53_s15 }
  0x16   :  { %s725_s19 = scalar_lea.hbm %s1008_s0, 128 }
  0x17   :  { %p726_p8 = scmp.ne.s32.totalorder %s1008_s0, %s725_s19  ;;  %p729_p9 = scmp.lt.u32.totalorder %s725_s19, %s1008_s0 }
  0x19   :  { %p731_p10 = pnand %p729_p9, %p726_p8 }
  0x1b   :  { %734 = shalt.err (!%p731_p10)
}
  0x1c   :  { %s735_s1 = scalar_lea.vmem %s27_s13, 128  ;;  %p740_p12 = scmp.lt.s32.totalorder %s27_s13, %s27_s13 }
  0x1d   :  { %p736_p11 = scmp.ne.s32.totalorder %s27_s13, %s735_s1  ;;  %p741_p13 = scmp.lt.s32.totalorder %s735_s1, %s735_s1 }
  0x1f   :  { %p742_p0 = por %p741_p13, %p740_p12 }
  0x21   :  { %p743_p1 = pnand %p742_p0, %p736_p11 }
  0x23   :  { %746 = shalt.err (!%p743_p1)
}
  0x24   :  { %29 = dma.hbm_to_vmem [thread:$0]  %s1008_s0, 128, %s27_s13, [#allocation3]  }
  0x25   :  { %s747_s29 = scalar_lea.hbm %s1013_s5, 2048 }
  0x26   :  { %p748_p2 = scmp.ne.s32.totalorder %s1013_s5, %s747_s29  ;;  %p751_p3 = scmp.lt.u32.totalorder %s747_s29, %s1013_s5 }
  0x28   :  { %p753_p4 = pnand %p751_p3, %p748_p2 }
  0x2a   :  { %756 = shalt.err (!%p753_p4)
}
  0x2b   :  { %s757_s17 = scalar_lea.vmem %s54_s15, 2048  ;;  %p762_p6 = scmp.lt.s32.totalorder %s54_s15, %s54_s15 }
  0x2c   :  { %p758_p5 = scmp.ne.s32.totalorder %s54_s15, %s757_s17  ;;  %p763_p7 = scmp.lt.s32.totalorder %s757_s17, %s757_s17 }
  0x2e   :  { %p764_p8 = por %p763_p7, %p762_p6 }
  0x30   :  { %p765_p9 = pnand %p764_p8, %p758_p5 }
  0x32   :  { %768 = shalt.err (!%p765_p9)
}
  0x33   :  { %59 = dma.hbm_to_vmem [thread:$0]  %s1013_s5, 2048, %s54_s15, [#allocation6], %s822_s27, %s822_s27, %s823_s28  }
  0x34   :  { %s826_s19 = smov [#allocation8]   ;;  %s769_s23 = scalar_lea.hbm %s1017_s9, 2048 }
  0x35   :  { %s71_s20 = sshll.u32 %s826_s19, 4  ;;  %p770_p10 = scmp.ne.s32.totalorder %s1017_s9, %s769_s23  ;;  %s72_s20 = int_to_ptr.vmem [resolvable:$true] %s71_s20 }
  0x36   :  { %p773_p11 = scmp.lt.u32.totalorder %s769_s23, %s1017_s9 }
  0x38   :  { %p775_p12 = pnand %p773_p11, %p770_p10 }
  0x3a   :  { %778 = shalt.err (!%p775_p12)
}
  0x3b   :  { %s779_s26 = scalar_lea.vmem %s72_s20, 2048  ;;  %p784_p0 = scmp.lt.s32.totalorder %s72_s20, %s72_s20 }
  0x3c   :  { %p780_p13 = scmp.ne.s32.totalorder %s72_s20, %s779_s26  ;;  %p785_p1 = scmp.lt.s32.totalorder %s779_s26, %s779_s26 }
  0x3e   :  { %p786_p2 = por %p785_p1, %p784_p0 }
  0x40   :  { %p787_p3 = pnand %p786_p2, %p780_p13 }
  0x42   :  { %790 = shalt.err (!%p787_p3)
}
  0x43   :  { %77 = dma.hbm_to_vmem [thread:$0]  %s1017_s9, 2048, %s72_s20, [#allocation9], %s822_s27, %s822_s27, %s823_s28  }
  0x44   :  { %813 = dma.done.wait [#allocation3], 128  }
  0x45   :  { %814 = vsyncadd [#allocation3], 4294967168 }
  0x46   :  { %815 = dma.done.wait [#allocation6], 4096  }
  0x47   :  { %816 = vsyncadd [#allocation6], 4294963200 }
  0x48   :  { %817 = dma.done.wait [#allocation9], 2048  }
  0x49   :  { %818 = vsyncadd [#allocation9], 4294965248  ;;  %v827_v0 = vmov 0.0|0.0   ;;  %vm828_vm0 = vmmov 0   ;;  %v829_v1 = vmov 0.0   ;;  %v93_v2 = vld [vmem:[#allocation5] sm:$0xff] }
  0x4a   :  { %617 = vmatprep.subr.bf16.mxu0 %v827_v0  ;;  %544 = vmatprep.mubr.msk.f32.mxu0 %vm828_vm0, %v829_v1  ;;  %v94_v3 = vld [vmem:[#allocation5 + $0x8] sm:$0xff]  ;;  %v95_v4 = vld [vmem:[#allocation5 + $0x10] sm:$0xff]  ;;  %v96_v6 = vld [vmem:[#allocation5 + $0x18] sm:$0xff]  ;;  %s830_s13 = smov [#allocation10]  }
  0x4b   :  { %641 = vmatprep.subr.bf16.mxu1 %v827_v0  ;;  %579 = vmatprep.mubr.msk.f32.mxu1 %vm828_vm0, %v829_v1  ;;  %v618_v5 = vpack.c.bf16 %v94_v3, %v93_v2  ;;  %v621_v7 = vpack.c.bf16 %v96_v6, %v95_v4  ;;  %v97_v8 = vld [vmem:[#allocation5 + $0x20] sm:$0xff]  ;;  %v98_v9 = vld [vmem:[#allocation5 + $0x28] sm:$0xff]  ;;  %v99_v11 = vld [vmem:[#allocation5 + $0x30] sm:$0xff]  ;;  %s443_s19 = sshll.u32 %s830_s13, 4  ;;  %s444_s19 = int_to_ptr.vmem [resolvable:$true] %s443_s19 }
  0x4c   :  { %v624_v10 = vpack.c.bf16 %v98_v9, %v97_v8  ;;  %v100_v12 = vld [vmem:[#allocation5 + $0x38] sm:$0xff]  ;;  %v101_v14 = vld [vmem:[#allocation5 + $0x40] sm:$0xff]  ;;  %v102_v15 = vld [vmem:[#allocation5 + $0x48] sm:$0xff]  ;;  %p796_p5 = scmp.lt.s32.totalorder %s444_s19, %s444_s19 }
  0x4d   :  { %619 = vmatpush3.bf16.msra.mxu0 %v618_v5  ;;  %v627_v13 = vpack.c.bf16 %v100_v12, %v99_v11  ;;  %v630_v16 = vpack.c.bf16 %v102_v15, %v101_v14  ;;  %v103_v17 = vld [vmem:[#allocation5 + $0x50] sm:$0xff]  ;;  %v104_v18 = vld [vmem:[#allocation5 + $0x58] sm:$0xff]  ;;  %v105_v20 = vld [vmem:[#allocation5 + $0x60] sm:$0xff] }
  0x4e   :  { %620 = vmatprep.subr.bf16.mxu0 %v827_v0  ;;  %v633_v19 = vpack.c.bf16 %v104_v18, %v103_v17  ;;  %v106_v21 = vld [vmem:[#allocation5 + $0x68] sm:$0xff]  ;;  %v107_v23 = vld [vmem:[#allocation5 + $0x70] sm:$0xff]  ;;  %v108_v24 = vld [vmem:[#allocation5 + $0x78] sm:$0xff] }
  0x4f   :  { %v636_v22 = vpack.c.bf16 %v106_v21, %v105_v20  ;;  %v639_v25 = vpack.c.bf16 %v108_v24, %v107_v23  ;;  %v92_v26 = vld [vmem:[#allocation2] sm:$0xff]  ;;  %v218_v27 = vld [vmem:[#allocation7] sm:$0xff]  ;;  %v219_v28 = vld [vmem:[#allocation7 + $0x8] sm:$0xff] }
  0x50   :  { %v642_v29 = vpack.c.bf16 %v219_v28, %v218_v27  ;;  %v454_v30 = vld [vmem:[%s1010_s2] ss:$0 sm:$0xff]  ;;  %v220_v36 = vld [vmem:[#allocation7 + $0x10] sm:$0xff]  ;;  %v222_v39 = vld [vmem:[#allocation7 + $0x20] sm:$0xff] }
  0x51   :  { %622 = vmatpush3.bf16.msra.mxu0 %v621_v7  ;;  %v221_v37 = vld [vmem:[#allocation7 + $0x18] sm:$0xff]  ;;  %v223_v40 = vld [vmem:[#allocation7 + $0x28] sm:$0xff]  ;;  %v224_v42 = vld [vmem:[#allocation7 + $0x30] sm:$0xff] }
  0x52   :  { %623 = vmatprep.subr.bf16.mxu0 %v827_v0  ;;  %643 = vmatpush3.bf16.msra.mxu1 %v642_v29  ;;  %v645_v38 = vpack.c.bf16 %v221_v37, %v220_v36  ;;  %v648_v41 = vpack.c.bf16 %v223_v40, %v222_v39  ;;  %v225_v43 = vld [vmem:[#allocation7 + $0x38] sm:$0xff]  ;;  %v226_v45 = vld [vmem:[#allocation7 + $0x40] sm:$0xff]  ;;  %v227_v46 = vld [vmem:[#allocation7 + $0x48] sm:$0xff] }
  0x53   :  { %644 = vmatprep.subr.bf16.mxu1 %v827_v0  ;;  %v651_v44 = vpack.c.bf16 %v225_v43, %v224_v42  ;;  %v654_v47 = vpack.c.bf16 %v227_v46, %v226_v45  ;;  %v228_v48 = vld [vmem:[#allocation7 + $0x50] sm:$0xff]  ;;  %v229_v49 = vld [vmem:[#allocation7 + $0x58] sm:$0xff]  ;;  %v230_v51 = vld [vmem:[#allocation7 + $0x60] sm:$0xff] }
  0x54   :  { %v657_v50 = vpack.c.bf16 %v229_v49, %v228_v48  ;;  %v231_v52 = vld [vmem:[#allocation7 + $0x68] sm:$0xff]  ;;  %v232_v54 = vld [vmem:[#allocation7 + $0x70] sm:$0xff]  ;;  %v233_v55 = vld [vmem:[#allocation7 + $0x78] sm:$0xff] }
  0x55   :  { %625 = vmatpush3.bf16.msra.mxu0 %v624_v10  ;;  %v660_v53 = vpack.c.bf16 %v231_v52, %v230_v51  ;;  %v663_v56 = vpack.c.bf16 %v233_v55, %v232_v54  ;;  %v455_v4 = vld [vmem:[%s1011_s3] ss:$0 sm:$0xff]  ;;  %v343_v9 = vld [vmem:[#allocation8] sm:$0xff]  ;;  %v344_v10 = vld [vmem:[#allocation8 + $0x8] sm:$0xff] }
  0x56   :  { %626 = vmatprep.subr.bf16.mxu0 %v827_v0  ;;  %646 = vmatpush3.bf16.msra.mxu1 %v645_v38  ;;  %v456_v6 = vld [vmem:[%s1012_s4] ss:$0 sm:$0xff]  ;;  %v666_v11 = vpack.c.bf16 %v344_v10, %v343_v9  ;;  %v345_v18 = vld [vmem:[#allocation8 + $0x10] sm:$0xff]  ;;  %v347_v21 = vld [vmem:[#allocation8 + $0x20] sm:$0xff] }
  0x57   :  { %647 = vmatprep.subr.bf16.mxu1 %v827_v0  ;;  %v457_v12 = vld [vmem:[%s1014_s6] ss:$0 sm:$0xff]  ;;  %v349_v24 = vld [vmem:[#allocation8 + $0x30] sm:$0xff]  ;;  %v351_v27 = vld [vmem:[#allocation8 + $0x40] sm:$0xff] }
  0x58   :  { %v352_v28 = vld [vmem:[#allocation8 + $0x48] sm:$0xff]  ;;  %v357_v36 = vld [vmem:[#allocation8 + $0x70] sm:$0xff]  ;;  %v358_v37 = vld [vmem:[#allocation8 + $0x78] sm:$0xff] }
  0x59   :  { %628 = vmatpush3.bf16.msra.mxu0 %v627_v13  ;;  %v678_v29 = vpack.c.bf16 %v352_v28, %v351_v27  ;;  %v687_v38 = vpack.c.bf16 %v358_v37, %v357_v36  ;;  %v458_v49 = vld [vmem:[%s1015_s7] ss:$0 sm:$0xff]  ;;  %s791_s7 = scalar_lea.vmem %s444_s19, 128 }
  0x5a   :  { %629 = vmatprep.subr.bf16.mxu0 %v827_v0  ;;  %649 = vmatpush3.bf16.msra.mxu1 %v648_v41  ;;  %p792_p4 = scmp.ne.s32.totalorder %s444_s19, %s791_s7  ;;  %p797_p6 = scmp.lt.s32.totalorder %s791_s7, %s791_s7 }
  0x5b   :  { %650 = vmatprep.subr.bf16.mxu1 %v827_v0 }
  0x5c   :  { %p798_p7 = por %p797_p6, %p796_p5 }
  0x5d   :  { %631 = vmatpush3.bf16.msra.mxu0 %v630_v16 }
  0x5e   :  { %632 = vmatprep.subr.bf16.mxu0 %v827_v0  ;;  %652 = vmatpush3.bf16.msra.mxu1 %v651_v44  ;;  %p799_p8 = pnand %p798_p7, %p792_p4 }
  0x5f   :  { %653 = vmatprep.subr.bf16.mxu1 %v827_v0 }
  0x61   :  { %634 = vmatpush3.bf16.msra.mxu0 %v633_v19  ;;  %v346_v19 = vld [vmem:[#allocation8 + $0x18] sm:$0xff] }
  0x62   :  { %635 = vmatprep.subr.bf16.mxu0 %v827_v0  ;;  %655 = vmatpush3.bf16.msra.mxu1 %v654_v47  ;;  %v669_v20 = vpack.c.bf16 %v346_v19, %v345_v18 }
  0x63   :  { %656 = vmatprep.subr.bf16.mxu1 %v827_v0 }
  0x65   :  { %637 = vmatpush3.bf16.msra.mxu0 %v636_v22  ;;  %v348_v22 = vld [vmem:[#allocation8 + $0x28] sm:$0xff] }
  0x66   :  { %638 = vmatprep.subr.bf16.mxu0 %v827_v0  ;;  %658 = vmatpush3.bf16.msra.mxu1 %v657_v50  ;;  %v672_v23 = vpack.c.bf16 %v348_v22, %v347_v21 }
  0x67   :  { %659 = vmatprep.subr.bf16.mxu1 %v827_v0 }
  0x69   :  { %640 = vmatpush3.bf16.msra.mxu0 %v639_v25  ;;  %v350_v25 = vld [vmem:[#allocation8 + $0x38] sm:$0xff] }
  0x6a   :  { %665 = vmatprep.subr.bf16.mxu0 %v827_v0  ;;  %661 = vmatpush3.bf16.msra.mxu1 %v660_v53  ;;  %v460_v53 = vld [vmem:[%s1018_s10] ss:$0 sm:$0xff] }
  0x6b   :  { %662 = vmatprep.subr.bf16.mxu1 %v827_v0 }
  0x6c   :  { %545 = vmatmul.mubr.f32.vlgmr.msra.gmra.mrb[0].mxu0 %v92_v26  ;;  %v675_v26 = vpack.c.bf16 %v350_v25, %v349_v24 }
  0x6d   :  { %614 = vmatprep.mubr.msk.f32.mxu0 %vm828_vm0, %v829_v1  ;;  %667 = vmatpush3.bf16.msra.mxu0 %v666_v11 }
  0x6e   :  { %664 = vmatpush3.bf16.msra.mxu1 %v663_v56  ;;  %668 = vmatprep.subr.bf16.mxu0 %v827_v0 }
  0x71   :  { %670 = vmatpush3.bf16.msra.mxu0 %v669_v20 }
  0x72   :  { %671 = vmatprep.subr.bf16.mxu0 %v827_v0 }
  0x75   :  { %673 = vmatpush3.bf16.msra.mxu0 %v672_v23 }
  0x76   :  { %674 = vmatprep.subr.bf16.mxu0 %v827_v0 }
  0x79   :  { %676 = vmatpush3.bf16.msra.mxu0 %v675_v26 }
  0x7a   :  { %677 = vmatprep.subr.bf16.mxu0 %v827_v0 }
  0x7d   :  { %679 = vmatpush3.bf16.msra.mxu0 %v678_v29 }
  0x7e   :  { %680 = vmatprep.subr.bf16.mxu0 %v827_v0 }
 0x13f   :  { %v182_v31 = vpop.f32.mrb[0].mxu0 }
 0x140   :  { %v183_v32 = vadd.f32 %v454_v30, %v182_v31  ;;  %v546_v33 = vpop.f32.mrb[1].mxu0  ;;  %v353_v30 = vld [vmem:[#allocation8 + $0x50] sm:$0xff]  ;;  %v354_v31 = vld [vmem:[#allocation8 + $0x58] sm:$0xff] }
 0x141   :  { %v355_v33 = vld [vmem:[#allocation8 + $0x60] sm:$0xff] }
 0x142   :  { %v186_v34 = vmax.f32 %v183_v32, 0.0  ;;  %v681_v32 = vpack.c.bf16 %v354_v31, %v353_v30 }
 0x144   :  { %189 = vadd.xlane.f32.xlu0 %v186_v34  ;;  %v191_v35 = vmul.f32 %v186_v34, %v186_v34  ;;  %682 = vmatpush3.bf16.msra.mxu0 %v681_v32 }
 0x145   :  { %683 = vmatprep.subr.bf16.mxu0 %v827_v0 }
 0x148   :  { %192 = vadd.xlane.f32.xlu0 %v191_v35 }
 0x1d1   :  { %v190_v57 = vpop.xlane.xlu0 %189 }
 0x1d2   :  { %v195_v58 = vmul.f32 0.03125, %v190_v57 }
 0x1d4   :  { %v197_v60 = vmul.f32 %v195_v58, %v195_v58  ;;  %v200_v2 = vsub.f32 %v186_v34, %v195_v58  ;;  %v356_v34 = vld [vmem:[#allocation8 + $0x68] sm:$0xff] }
 0x1d5   :  { %v193_v59 = vpop.xlane.xlu0 %192  ;;  %v684_v35 = vpack.c.bf16 %v356_v34, %v355_v33 }
 0x1d6   :  { %v196_v61 = vmul.f32 0.03125, %v193_v59 }
 0x1d7   :  { %685 = vmatpush3.bf16.msra.mxu0 %v684_v35 }
 0x1d8   :  { %v198_v62 = vsub.f32 %v196_v61, %v197_v60  ;;  %686 = vmatprep.subr.bf16.mxu0 %v827_v0  ;;  %v459_v0 = vld [vmem:[%s1016_s8] ss:$0 sm:$0xff] }
 0x1da   :  { %v199_v63 = vmax.f32 %v198_v62, 0.0 }
 0x1db   :  { %688 = vmatpush3.bf16.msra.mxu0 %v687_v38 }
 0x1dc   :  { %v201_v1 = vadd.f32 1e-05, %v199_v63 }
 0x1de   :  { %699 = vrsqrt.f32 %v201_v1 }
 0x1e8   :  { %v700_v3 = vpop.eup %699 }
 0x1e9   :  { %v203_v5 = vmul.f32 %v700_v3, %v200_v2 }
 0x1eb   :  { %v210_v7 = vmul.f32 %v455_v4, %v203_v5 }
 0x1ed   :  { %v217_v8 = vadd.f32 %v456_v6, %v210_v7 }
 0x1ef   :  { %580 = vmatmul.mubr.f32.vlgmr.msra.gmra.mrb[0].mxu1 %v217_v8 }
 0x2c2   :  { %v307_v13 = vpop.f32.mrb[0].mxu1 }
 0x2c3   :  { %v308_v14 = vadd.f32 %v457_v12, %v307_v13  ;;  %v581_v15 = vpop.f32.mrb[1].mxu1 }
 0x2c5   :  { %v311_v16 = vmax.f32 %v308_v14, 0.0 }
 0x2c7   :  { %314 = vadd.xlane.f32.xlu1 %v311_v16  ;;  %v316_v17 = vmul.f32 %v311_v16, %v311_v16 }
 0x2cb   :  { %317 = vadd.xlane.f32.xlu1 %v316_v17 }
 0x354   :  { %v315_v39 = vpop.xlane.xlu1 %314 }
 0x355   :  { %v320_v40 = vmul.f32 0.0625, %v315_v39 }
 0x357   :  { %v322_v42 = vmul.f32 %v320_v40, %v320_v40  ;;  %v325_v47 = vsub.f32 %v311_v16, %v320_v40 }
 0x358   :  { %v318_v41 = vpop.xlane.xlu1 %317 }
 0x359   :  { %v321_v43 = vmul.f32 0.0625, %v318_v41 }
 0x35b   :  { %v323_v44 = vsub.f32 %v321_v43, %v322_v42 }
 0x35d   :  { %v324_v45 = vmax.f32 %v323_v44, 0.0 }
 0x35f   :  { %v326_v46 = vadd.f32 1e-05, %v324_v45 }
 0x361   :  { %701 = vrsqrt.f32 %v326_v46 }
 0x36b   :  { %v702_v48 = vpop.eup %701 }
 0x36c   :  { %v328_v50 = vmul.f32 %v702_v48, %v325_v47 }
 0x36e   :  { %v335_v51 = vmul.f32 %v458_v49, %v328_v50 }
 0x370   :  { %v342_v52 = vadd.f32 %v459_v0, %v335_v51 }
 0x372   :  { %615 = vmatmul.mubr.f32.vlgmr.msra.gmra.mrb[2].mxu0 %v342_v52 }
 0x445   :  { %v432_v54 = vpop.f32.mrb[2].mxu0 }
 0x446   :  { %v433_v55 = vadd.f32 %v460_v53, %v432_v54  ;;  %v616_v56 = vpop.f32.mrb[3].mxu0 }
 0x448   :  { %436 = vst [vmem:[#allocation10] sm:$0xff] %v433_v55 }
 0x449   :  { %802 = shalt.err (!%p799_p8)
}
 0x44a   :  { %s803_s21 = scalar_lea.hbm %s1019_s11, 128 }
 0x44b   :  { %p804_p9 = scmp.ne.s32.totalorder %s1019_s11, %s803_s21  ;;  %p807_p10 = scmp.lt.u32.totalorder %s803_s21, %s1019_s11 }
 0x44d   :  { %p809_p11 = pnand %p807_p10, %p804_p9 }
 0x44f   :  { %812 = shalt.err (!%p809_p11)
}
 0x450   :  { %446 = dma.vmem_to_hbm [thread:$0]  %s444_s19, 128, %s1019_s11, [#allocation4]  }
 0x451   :  { %819 = dma.done.wait [#allocation4], 128  }
 0x452   :  { %820 = vsyncadd [#allocation4], 4294967168 }
 0x453   :  { %450 = vsyncpa [#allocation3], 1 }
 0x454   :  { %451 = vsyncpa [#allocation6], 1 }
 0x455   :  { %452 = vsyncpa [#allocation9], 1 }
 0x456   :  { %453 = vsyncpa [#allocation4], 1 }

// kernel: tpu_custom_call.1
= control target key start
LH: loop header
LB: loop body
LE: loop exit
PB: predicated region body
PF: predicated region fallthrough
CT: control target
= control target key end

     0   :  { %16 = vsyncpa [#allocation3], 0  ;;  %s1008_s0 = inlined_call_operand.hbm [shape: f32[8,128], index: 0, kind: input, shape index: {}]   ;;  %s1009_s1 = inlined_call_operand.hbm [shape: f32[128,128], index: 1, kind: input, shape index: {}]   ;;  %s1010_s2 = inlined_call_operand.vmem [shape: f32[1,128], index: 2, kind: input, shape index: {}]   ;;  %s1011_s3 = inlined_call_operand.vmem [shape: f32[1,128], index: 3, kind: input, shape index: {}]   ;;  %s1012_s4 = inlined_call_operand.vmem [shape: f32[1,128], index: 4, kind: input, shape index: {}]   ;;  %s1013_s5 = inlined_call_operand.hbm [shape: f32[128,128], index: 5, kind: input, shape index: {}]   ;;  %s1014_s6 = inlined_call_operand.vmem [shape: f32[1,128], index: 6, kind: input, shape index: {}]   ;;  %s1015_s7 = inlined_call_operand.vmem [shape: f32[1,128], index: 7, kind: input, shape index: {}]   ;;  %s1016_s8 = inlined_call_operand.vmem [shape: f32[1,128], index: 8, kind: input, shape index: {}]   ;;  %s1017_s9 = inlined_call_operand.hbm [shape: f32[128,128], index: 9, kind: input, shape index: {}]   ;;  %s1018_s10 = inlined_call_operand.vmem [shape: f32[1,128], index: 10, kind: input, shape index: {}]   ;;  %s1019_s11 = inlined_call_operand.hbm [shape: f32[8,128], index: 11, kind: output, shape index: {}]  }
   0x1   :  { %17 = vsyncpa [#allocation6], 0 }
   0x2   :  { %18 = vsyncpa [#allocation9], 0 }
   0x3   :  { %19 = vsyncpa [#allocation4], 0  ;;  %s821_s17 = smov [#allocation5]   ;;  %s703_s21 = scalar_lea.hbm %s1009_s1, 2048 }
   0x4   :  { %s35_s18 = sshll.u32 %s821_s17, 4  ;;  %p704_p0 = scmp.ne.s32.totalorder %s1009_s1, %s703_s21  ;;  %s36_s18 = int_to_ptr.vmem [resolvable:$true] %s35_s18 }
   0x5   :  { %p707_p1 = scmp.lt.u32.totalorder %s703_s21, %s1009_s1 }
   0x7   :  { %p709_p2 = pnand %p707_p1, %p704_p0 }
   0x9   :  { %712 = shalt.err (!%p709_p2)
}
   0xa   :  { %s713_s26 = scalar_lea.vmem %s36_s18, 2048  ;;  %p718_p4 = scmp.lt.s32.totalorder %s36_s18, %s36_s18 }
   0xb   :  { %p714_p3 = scmp.ne.s32.totalorder %s36_s18, %s713_s26  ;;  %p719_p5 = scmp.lt.s32.totalorder %s713_s26, %s713_s26 }
   0xd   :  { %p720_p6 = por %p719_p5, %p718_p4 }
   0xf   :  { %p721_p7 = pnand %p720_p6, %p714_p3 }
  0x11   :  { %724 = shalt.err (!%p721_p7)
}
  0x12   :  { %s822_s27 = smov 128   ;;  %s823_s28 = smov 8  }
  0x13   :  { %41 = dma.hbm_to_vmem [thread:$0]  %s1009_s1, 2048, %s36_s18, [#allocation6], %s822_s27, %s822_s27, %s823_s28  }
  0x14   :  { %s824_s12 = smov [#allocation2]   ;;  %s825_s14 = smov [#allocation7]  }
  0x15   :  { %s26_s13 = sshll.u32 %s824_s12, 4  ;;  %s53_s15 = sshll.u32 %s825_s14, 4  ;;  %s27_s13 = int_to_ptr.vmem [resolvable:$true] %s26_s13  ;;  %s54_s15 = int_to_ptr.vmem [resolvable:$true] %s53_s15 }
  0x16   :  { %s725_s19 = scalar_lea.hbm %s1008_s0, 128 }
  0x17   :  { %p726_p8 = scmp.ne.s32.totalorder %s1008_s0, %s725_s19  ;;  %p729_p9 = scmp.lt.u32.totalorder %s725_s19, %s1008_s0 }
  0x19   :  { %p731_p10 = pnand %p729_p9, %p726_p8 }
  0x1b   :  { %734 = shalt.err (!%p731_p10)
}
  0x1c   :  { %s735_s1 = scalar_lea.vmem %s27_s13, 128  ;;  %p740_p12 = scmp.lt.s32.totalorder %s27_s13, %s27_s13 }
  0x1d   :  { %p736_p11 = scmp.ne.s32.totalorder %s27_s13, %s735_s1  ;;  %p741_p13 = scmp.lt.s32.totalorder %s735_s1, %s735_s1 }
  0x1f   :  { %p742_p0 = por %p741_p13, %p740_p12 }
  0x21   :  { %p743_p1 = pnand %p742_p0, %p736_p11 }
  0x23   :  { %746 = shalt.err (!%p743_p1)
}
  0x24   :  { %29 = dma.hbm_to_vmem [thread:$0]  %s1008_s0, 128, %s27_s13, [#allocation3]  }
  0x25   :  { %s747_s29 = scalar_lea.hbm %s1013_s5, 2048 }
  0x26   :  { %p748_p2 = scmp.ne.s32.totalorder %s1013_s5, %s747_s29  ;;  %p751_p3 = scmp.lt.u32.totalorder %s747_s29, %s1013_s5 }
  0x28   :  { %p753_p4 = pnand %p751_p3, %p748_p2 }
  0x2a   :  { %756 = shalt.err (!%p753_p4)
}
  0x2b   :  { %s757_s17 = scalar_lea.vmem %s54_s15, 2048  ;;  %p762_p6 = scmp.lt.s32.totalorder %s54_s15, %s54_s15 }
  0x2c   :  { %p758_p5 = scmp.ne.s32.totalorder %s54_s15, %s757_s17  ;;  %p763_p7 = scmp.lt.s32.totalorder %s757_s17, %s757_s17 }
  0x2e   :  { %p764_p8 = por %p763_p7, %p762_p6 }
  0x30   :  { %p765_p9 = pnand %p764_p8, %p758_p5 }
  0x32   :  { %768 = shalt.err (!%p765_p9)
}
  0x33   :  { %59 = dma.hbm_to_vmem [thread:$0]  %s1013_s5, 2048, %s54_s15, [#allocation6], %s822_s27, %s822_s27, %s823_s28  }
  0x34   :  { %s826_s19 = smov [#allocation8]   ;;  %s769_s23 = scalar_lea.hbm %s1017_s9, 2048 }
  0x35   :  { %s71_s20 = sshll.u32 %s826_s19, 4  ;;  %p770_p10 = scmp.ne.s32.totalorder %s1017_s9, %s769_s23  ;;  %s72_s20 = int_to_ptr.vmem [resolvable:$true] %s71_s20 }
  0x36   :  { %p773_p11 = scmp.lt.u32.totalorder %s769_s23, %s1017_s9 }
  0x38   :  { %p775_p12 = pnand %p773_p11, %p770_p10 }
  0x3a   :  { %778 = shalt.err (!%p775_p12)
}
  0x3b   :  { %s779_s26 = scalar_lea.vmem %s72_s20, 2048  ;;  %p784_p0 = scmp.lt.s32.totalorder %s72_s20, %s72_s20 }
  0x3c   :  { %p780_p13 = scmp.ne.s32.totalorder %s72_s20, %s779_s26  ;;  %p785_p1 = scmp.lt.s32.totalorder %s779_s26, %s779_s26 }
  0x3e   :  { %p786_p2 = por %p785_p1, %p784_p0 }
  0x40   :  { %p787_p3 = pnand %p786_p2, %p780_p13 }
  0x42   :  { %790 = shalt.err (!%p787_p3)
}
  0x43   :  { %77 = dma.hbm_to_vmem [thread:$0]  %s1017_s9, 2048, %s72_s20, [#allocation9], %s822_s27, %s822_s27, %s823_s28  }
  0x44   :  { %813 = dma.done.wait [#allocation3], 128  }
  0x45   :  { %814 = vsyncadd [#allocation3], 4294967168 }
  0x46   :  { %815 = dma.done.wait [#allocation6], 4096  }
  0x47   :  { %816 = vsyncadd [#allocation6], 4294963200 }
  0x48   :  { %817 = dma.done.wait [#allocation9], 2048  }
  0x49   :  { %818 = vsyncadd [#allocation9], 4294965248  ;;  %v827_v0 = vmov 0.0|0.0   ;;  %vm828_vm0 = vmmov 0   ;;  %v829_v1 = vmov 0.0   ;;  %v93_v2 = vld [vmem:[#allocation5] sm:$0xff] }
  0x4a   :  { %617 = vmatprep.subr.bf16.mxu0 %v827_v0  ;;  %544 = vmatprep.mubr.msk.f32.mxu0 %vm828_vm0, %v829_v1  ;;  %v94_v3 = vld [vmem:[#allocation5 + $0x8] sm:$0xff]  ;;  %v95_v4 = vld [vmem:[#allocation5 + $0x10] sm:$0xff]  ;;  %v96_v6 = vld [vmem:[#allocation5 + $0x18] sm:$0xff]  ;;  %s830_s13 = smov [#allocation10]  }
  0x4b   :  { %641 = vmatprep.subr.bf16.mxu1 %v827_v0  ;;  %579 = vmatprep.mubr.msk.f32.mxu1 %vm828_vm0, %v829_v1  ;;  %v618_v5 = vpack.c.bf16 %v94_v3, %v93_v2  ;;  %v621_v7 = vpack.c.bf16 %v96_v6, %v95_v4  ;;  %v97_v8 = vld [vmem:[#allocation5 + $0x20] sm:$0xff]  ;;  %v98_v9 = vld [vmem:[#allocation5 + $0x28] sm:$0xff]  ;;  %v99_v11 = vld [vmem:[#allocation5 + $0x30] sm:$0xff]  ;;  %s443_s19 = sshll.u32 %s830_s13, 4  ;;  %s444_s19 = int_to_ptr.vmem [resolvable:$true] %s443_s19 }
  0x4c   :  { %v624_v10 = vpack.c.bf16 %v98_v9, %v97_v8  ;;  %v100_v12 = vld [vmem:[#allocation5 + $0x38] sm:$0xff]  ;;  %v101_v14 = vld [vmem:[#allocation5 + $0x40] sm:$0xff]  ;;  %v102_v15 = vld [vmem:[#allocation5 + $0x48] sm:$0xff]  ;;  %p796_p5 = scmp.lt.s32.totalorder %s444_s19, %s444_s19 }
  0x4d   :  { %619 = vmatpush3.bf16.msra.mxu0 %v618_v5  ;;  %v627_v13 = vpack.c.bf16 %v100_v12, %v99_v11  ;;  %v630_v16 = vpack.c.bf16 %v102_v15, %v101_v14  ;;  %v103_v17 = vld [vmem:[#allocation5 + $0x50] sm:$0xff]  ;;  %v104_v18 = vld [vmem:[#allocation5 + $0x58] sm:$0xff]  ;;  %v105_v20 = vld [vmem:[#allocation5 + $0x60] sm:$0xff] }
  0x4e   :  { %620 = vmatprep.subr.bf16.mxu0 %v827_v0  ;;  %v633_v19 = vpack.c.bf16 %v104_v18, %v103_v17  ;;  %v106_v21 = vld [vmem:[#allocation5 + $0x68] sm:$0xff]  ;;  %v107_v23 = vld [vmem:[#allocation5 + $0x70] sm:$0xff]  ;;  %v108_v24 = vld [vmem:[#allocation5 + $0x78] sm:$0xff] }
  0x4f   :  { %v636_v22 = vpack.c.bf16 %v106_v21, %v105_v20  ;;  %v639_v25 = vpack.c.bf16 %v108_v24, %v107_v23  ;;  %v92_v26 = vld [vmem:[#allocation2] sm:$0xff]  ;;  %v218_v27 = vld [vmem:[#allocation7] sm:$0xff]  ;;  %v219_v28 = vld [vmem:[#allocation7 + $0x8] sm:$0xff] }
  0x50   :  { %v642_v29 = vpack.c.bf16 %v219_v28, %v218_v27  ;;  %v454_v30 = vld [vmem:[%s1010_s2] ss:$0 sm:$0xff]  ;;  %v220_v36 = vld [vmem:[#allocation7 + $0x10] sm:$0xff]  ;;  %v222_v39 = vld [vmem:[#allocation7 + $0x20] sm:$0xff] }
  0x51   :  { %622 = vmatpush3.bf16.msra.mxu0 %v621_v7  ;;  %v221_v37 = vld [vmem:[#allocation7 + $0x18] sm:$0xff]  ;;  %v223_v40 = vld [vmem:[#allocation7 + $0x28] sm:$0xff]  ;;  %v224_v42 = vld [vmem:[#allocation7 + $0x30] sm:$0xff] }
  0x52   :  { %623 = vmatprep.subr.bf16.mxu0 %v827_v0  ;;  %643 = vmatpush3.bf16.msra.mxu1 %v642_v29  ;;  %v645_v38 = vpack.c.bf16 %v221_v37, %v220_v36  ;;  %v648_v41 = vpack.c.bf16 %v223_v40, %v222_v39  ;;  %v225_v43 = vld [vmem:[#allocation7 + $0x38] sm:$0xff]  ;;  %v226_v45 = vld [vmem:[#allocation7 + $0x40] sm:$0xff]  ;;  %v227_v46 = vld [vmem:[#allocation7 + $0x48] sm:$0xff] }
  0x53   :  { %644 = vmatprep.subr.bf16.mxu1 %v827_v0  ;;  %v651_v44 = vpack.c.bf16 %v225_v43, %v224_v42  ;;  %v654_v47 = vpack.c.bf16 %v227_v46, %v226_v45  ;;  %v228_v48 = vld [vmem:[#allocation7 + $0x50] sm:$0xff]  ;;  %v229_v49 = vld [vmem:[#allocation7 + $0x58] sm:$0xff]  ;;  %v230_v51 = vld [vmem:[#allocation7 + $0x60] sm:$0xff] }
  0x54   :  { %v657_v50 = vpack.c.bf16 %v229_v49, %v228_v48  ;;  %v231_v52 = vld [vmem:[#allocation7 + $0x68] sm:$0xff]  ;;  %v232_v54 = vld [vmem:[#allocation7 + $0x70] sm:$0xff]  ;;  %v233_v55 = vld [vmem:[#allocation7 + $0x78] sm:$0xff] }
  0x55   :  { %625 = vmatpush3.bf16.msra.mxu0 %v624_v10  ;;  %v660_v53 = vpack.c.bf16 %v231_v52, %v230_v51  ;;  %v663_v56 = vpack.c.bf16 %v233_v55, %v232_v54  ;;  %v455_v4 = vld [vmem:[%s1011_s3] ss:$0 sm:$0xff]  ;;  %v343_v9 = vld [vmem:[#allocation8] sm:$0xff]  ;;  %v344_v10 = vld [vmem:[#allocation8 + $0x8] sm:$0xff] }
  0x56   :  { %626 = vmatprep.subr.bf16.mxu0 %v827_v0  ;;  %646 = vmatpush3.bf16.msra.mxu1 %v645_v38  ;;  %v456_v6 = vld [vmem:[%s1012_s4] ss:$0 sm:$0xff]  ;;  %v666_v11 = vpack.c.bf16 %v344_v10, %v343_v9  ;;  %v345_v18 = vld [vmem:[#allocation8 + $0x10] sm:$0xff]  ;;  %v347_v21 = vld [vmem:[#allocation8 + $0x20] sm:$0xff] }
  0x57   :  { %647 = vmatprep.subr.bf16.mxu1 %v827_v0  ;;  %v457_v12 = vld [vmem:[%s1014_s6] ss:$0 sm:$0xff]  ;;  %v349_v24 = vld [vmem:[#allocation8 + $0x30] sm:$0xff]  ;;  %v351_v27 = vld [vmem:[#allocation8 + $0x40] sm:$0xff] }
  0x58   :  { %v352_v28 = vld [vmem:[#allocation8 + $0x48] sm:$0xff]  ;;  %v357_v36 = vld [vmem:[#allocation8 + $0x70] sm:$0xff]  ;;  %v358_v37 = vld [vmem:[#allocation8 + $0x78] sm:$0xff] }
  0x59   :  { %628 = vmatpush3.bf16.msra.mxu0 %v627_v13  ;;  %v678_v29 = vpack.c.bf16 %v352_v28, %v351_v27  ;;  %v687_v38 = vpack.c.bf16 %v358_v37, %v357_v36  ;;  %v458_v49 = vld [vmem:[%s1015_s7] ss:$0 sm:$0xff]  ;;  %s791_s7 = scalar_lea.vmem %s444_s19, 128 }
  0x5a   :  { %629 = vmatprep.subr.bf16.mxu0 %v827_v0  ;;  %649 = vmatpush3.bf16.msra.mxu1 %v648_v41  ;;  %p792_p4 = scmp.ne.s32.totalorder %s444_s19, %s791_s7  ;;  %p797_p6 = scmp.lt.s32.totalorder %s791_s7, %s791_s7 }
  0x5b   :  { %650 = vmatprep.subr.bf16.mxu1 %v827_v0 }
  0x5c   :  { %p798_p7 = por %p797_p6, %p796_p5 }
  0x5d   :  { %631 = vmatpush3.bf16.msra.mxu0 %v630_v16 }
  0x5e   :  { %632 = vmatprep.subr.bf16.mxu0 %v827_v0  ;;  %652 = vmatpush3.bf16.msra.mxu1 %v651_v44  ;;  %p799_p8 = pnand %p798_p7, %p792_p4 }
  0x5f   :  { %653 = vmatprep.subr.bf16.mxu1 %v827_v0 }
  0x61   :  { %634 = vmatpush3.bf16.msra.mxu0 %v633_v19  ;;  %v346_v19 = vld [vmem:[#allocation8 + $0x18] sm:$0xff] }
  0x62   :  { %635 = vmatprep.subr.bf16.mxu0 %v827_v0  ;;  %655 = vmatpush3.bf16.msra.mxu1 %v654_v47  ;;  %v669_v20 = vpack.c.bf16 %v346_v19, %v345_v18 }
  0x63   :  { %656 = vmatprep.subr.bf16.mxu1 %v827_v0 }
  0x65   :  { %637 = vmatpush3.bf16.msra.mxu0 %v636_v22  ;;  %v348_v22 = vld [vmem:[#allocation8 + $0x28] sm:$0xff] }
  0x66   :  { %638 = vmatprep.subr.bf16.mxu0 %v827_v0  ;;  %658 = vmatpush3.bf16.msra.mxu1 %v657_v50  ;;  %v672_v23 = vpack.c.bf16 %v348_v22, %v347_v21 }
  0x67   :  { %659 = vmatprep.subr.bf16.mxu1 %v827_v0 }
  0x69   :  { %640 = vmatpush3.bf16.msra.mxu0 %v639_v25  ;;  %v350_v25 = vld [vmem:[#allocation8 + $0x38] sm:$0xff] }
  0x6a   :  { %665 = vmatprep.subr.bf16.mxu0 %v827_v0  ;;  %661 = vmatpush3.bf16.msra.mxu1 %v660_v53  ;;  %v460_v53 = vld [vmem:[%s1018_s10] ss:$0 sm:$0xff] }
  0x6b   :  { %662 = vmatprep.subr.bf16.mxu1 %v827_v0 }
  0x6c   :  { %545 = vmatmul.mubr.f32.vlgmr.msra.gmra.mrb[0].mxu0 %v92_v26  ;;  %v675_v26 = vpack.c.bf16 %v350_v25, %v349_v24 }
  0x6d   :  { %614 = vmatprep.mubr.msk.f32.mxu0 %vm828_vm0, %v829_v1  ;;  %667 = vmatpush3.bf16.msra.mxu0 %v666_v11 }
  0x6e   :  { %664 = vmatpush3.bf16.msra.mxu1 %v663_v56  ;;  %668 = vmatprep.subr.bf16.mxu0 %v827_v0 }
  0x71   :  { %670 = vmatpush3.bf16.msra.mxu0 %v669_v20 }
  0x72   :  { %671 = vmatprep.subr.bf16.mxu0 %v827_v0 }
  0x75   :  { %673 = vmatpush3.bf16.msra.mxu0 %v672_v23 }
  0x76   :  { %674 = vmatprep.subr.bf16.mxu0 %v827_v0 }
  0x79   :  { %676 = vmatpush3.bf16.msra.mxu0 %v675_v26 }
  0x7a   :  { %677 = vmatprep.subr.bf16.mxu0 %v827_v0 }
  0x7d   :  { %679 = vmatpush3.bf16.msra.mxu0 %v678_v29 }
  0x7e   :  { %680 = vmatprep.subr.bf16.mxu0 %v827_v0 }
 0x13f   :  { %v182_v31 = vpop.f32.mrb[0].mxu0 }
 0x140   :  { %v183_v32 = vadd.f32 %v454_v30, %v182_v31  ;;  %v546_v33 = vpop.f32.mrb[1].mxu0  ;;  %v353_v30 = vld [vmem:[#allocation8 + $0x50] sm:$0xff]  ;;  %v354_v31 = vld [vmem:[#allocation8 + $0x58] sm:$0xff] }
 0x141   :  { %v355_v33 = vld [vmem:[#allocation8 + $0x60] sm:$0xff] }
 0x142   :  { %v186_v34 = vmax.f32 %v183_v32, 0.0  ;;  %v681_v32 = vpack.c.bf16 %v354_v31, %v353_v30 }
 0x144   :  { %189 = vadd.xlane.f32.xlu0 %v186_v34  ;;  %v191_v35 = vmul.f32 %v186_v34, %v186_v34  ;;  %682 = vmatpush3.bf16.msra.mxu0 %v681_v32 }
 0x145   :  { %683 = vmatprep.subr.bf16.mxu0 %v827_v0 }
 0x148   :  { %192 = vadd.xlane.f32.xlu0 %v191_v35 }
 0x1d1   :  { %v190_v57 = vpop.xlane.xlu0 %189 }
 0x1d2   :  { %v195_v58 = vmul.f32 0.03125, %v190_v57 }
 0x1d4   :  { %v197_v60 = vmul.f32 %v195_v58, %v195_v58  ;;  %v200_v2 = vsub.f32 %v186_v34, %v195_v58  ;;  %v356_v34 = vld [vmem:[#allocation8 + $0x68] sm:$0xff] }
 0x1d5   :  { %v193_v59 = vpop.xlane.xlu0 %192  ;;  %v684_v35 = vpack.c.bf16 %v356_v34, %v355_v33 }
 0x1d6   :  { %v196_v61 = vmul.f32 0.03125, %v193_v59 }
 0x1d7   :  { %685 = vmatpush3.bf16.msra.mxu0 %v684_v35 }
 0x1d8   :  { %v198_v62 = vsub.f32 %v196_v61, %v197_v60  ;;  %686 = vmatprep.subr.bf16.mxu0 %v827_v0  ;;  %v459_v0 = vld [vmem:[%s1016_s8] ss:$0 sm:$0xff] }
 0x1da   :  { %v199_v63 = vmax.f32 %v198_v62, 0.0 }
 0x1db   :  { %688 = vmatpush3.bf16.msra.mxu0 %v687_v38 }
 0x1dc   :  { %v201_v1 = vadd.f32 1e-05, %v199_v63 }
 0x1de   :  { %699 = vrsqrt.f32 %v201_v1 }
 0x1e8   :  { %v700_v3 = vpop.eup %699 }
 0x1e9   :  { %v203_v5 = vmul.f32 %v700_v3, %v200_v2 }
 0x1eb   :  { %v210_v7 = vmul.f32 %v455_v4, %v203_v5 }
 0x1ed   :  { %v217_v8 = vadd.f32 %v456_v6, %v210_v7 }
 0x1ef   :  { %580 = vmatmul.mubr.f32.vlgmr.msra.gmra.mrb[0].mxu1 %v217_v8 }
 0x2c2   :  { %v307_v13 = vpop.f32.mrb[0].mxu1 }
 0x2c3   :  { %v308_v14 = vadd.f32 %v457_v12, %v307_v13  ;;  %v581_v15 = vpop.f32.mrb[1].mxu1 }
 0x2c5   :  { %v311_v16 = vmax.f32 %v308_v14, 0.0 }
 0x2c7   :  { %314 = vadd.xlane.f32.xlu1 %v311_v16  ;;  %v316_v17 = vmul.f32 %v311_v16, %v311_v16 }
 0x2cb   :  { %317 = vadd.xlane.f32.xlu1 %v316_v17 }
 0x354   :  { %v315_v39 = vpop.xlane.xlu1 %314 }
 0x355   :  { %v320_v40 = vmul.f32 0.0625, %v315_v39 }
 0x357   :  { %v322_v42 = vmul.f32 %v320_v40, %v320_v40  ;;  %v325_v47 = vsub.f32 %v311_v16, %v320_v40 }
 0x358   :  { %v318_v41 = vpop.xlane.xlu1 %317 }
 0x359   :  { %v321_v43 = vmul.f32 0.0625, %v318_v41 }
 0x35b   :  { %v323_v44 = vsub.f32 %v321_v43, %v322_v42 }
 0x35d   :  { %v324_v45 = vmax.f32 %v323_v44, 0.0 }
 0x35f   :  { %v326_v46 = vadd.f32 1e-05, %v324_v45 }
 0x361   :  { %701 = vrsqrt.f32 %v326_v46 }
 0x36b   :  { %v702_v48 = vpop.eup %701 }
 0x36c   :  { %v328_v50 = vmul.f32 %v702_v48, %v325_v47 }
 0x36e   :  { %v335_v51 = vmul.f32 %v458_v49, %v328_v50 }
 0x370   :  { %v342_v52 = vadd.f32 %v459_v0, %v335_v51 }
 0x372   :  { %615 = vmatmul.mubr.f32.vlgmr.msra.gmra.mrb[2].mxu0 %v342_v52 }
 0x445   :  { %v432_v54 = vpop.f32.mrb[2].mxu0 }
 0x446   :  { %v433_v55 = vadd.f32 %v460_v53, %v432_v54  ;;  %v616_v56 = vpop.f32.mrb[3].mxu0 }
 0x448   :  { %436 = vst [vmem:[#allocation10] sm:$0xff] %v433_v55 }
 0x449   :  { %802 = shalt.err (!%p799_p8)
}
 0x44a   :  { %s803_s21 = scalar_lea.hbm %s1019_s11, 128 }
 0x44b   :  { %p804_p9 = scmp.ne.s32.totalorder %s1019_s11, %s803_s21  ;;  %p807_p10 = scmp.lt.u32.totalorder %s803_s21, %s1019_s11 }
 0x44d   :  { %p809_p11 = pnand %p807_p10, %p804_p9 }
 0x44f   :  { %812 = shalt.err (!%p809_p11)
}
 0x450   :  { %446 = dma.vmem_to_hbm [thread:$0]  %s444_s19, 128, %s1019_s11, [#allocation4]  }
 0x451   :  { %819 = dma.done.wait [#allocation4], 128  }
 0x452   :  { %820 = vsyncadd [#allocation4], 4294967168 }
 0x453   :  { %450 = vsyncpa [#allocation3], 1 }
 0x454   :  { %451 = vsyncpa [#allocation6], 1 }
 0x455   :  { %452 = vsyncpa [#allocation9], 1 }
 0x456   :  { %453 = vsyncpa [#allocation4], 1 }

</bundles_post_ra>
